<compile_context>
chip_gen: v7x
topology: tpu7x:2x2x1
jax: 0.10.0
libtpu: 0.0.40
codegen_flags: <defaults>
</compile_context>

<pallas_src>
import jax
import jax.numpy as jnp
from jax.experimental import pallas as pl
from jax.experimental.pallas import tpu as pltpu

_TARGET_STEP_BYTES = 2 << 20     # ~2 MiB of HBM traffic moved per grid step
_MAX_TILE_VMEM_BYTES = 24 << 20  # budget for the double-buffered column tiles


def _round_down(x: int, m: int) -> int:
    return (x // m) * m


def _round_up(x: int, m: int) -> int:
    return ((x + m - 1) // m) * m


def _vmem_limit(needed_bytes: int) -> int:
    # Leave slack over the computed working set; clamp to a value every
    # generation can provide (v5e scoped default is only 16 MiB, v7x has 64).
    return int(min(max(needed_bytes * 3 // 2 + (2 << 20), 32 << 20), 64 << 20))


def _nconv_kernel(at_ref, x_ref, o_ref):
    # at_ref: [V, W]  pre-transposed adjacency (grid-invariant, fetched once)
    # x_ref : [W, T]  column tile of features
    # o_ref : [V, T]  matching output tile
    # out[v, col] = sum_w A[w, v] * x[w, col]  ==  AT @ X
    o_ref[...] = jnp.dot(
        at_ref[...], x_ref[...], preferred_element_type=jnp.float32
    ).astype(o_ref.dtype)


def _launch(at, x_in, *, out_shape, grid, a_index_map, x_spec, o_spec,
            dim_sem, vmem_limit, cost):
    v, w = at.shape

    def call(single_buffer_a):
        # Grid-invariant adjacency only needs one VMEM buffer.
        a_kwargs = {"pipeline_mode": pl.Buffered(1)} if single_buffer_a else {}
        a_spec = pl.BlockSpec((v, w), a_index_map, **a_kwargs)
        return pl.pallas_call(
            _nconv_kernel,
            out_shape=out_shape,
            grid_spec=pltpu.PrefetchScalarGridSpec(
                num_scalar_prefetch=0,
                grid=grid,
                in_specs=[a_spec, x_spec],
                out_specs=o_spec,
            ),
            compiler_params=pltpu.CompilerParams(
                dimension_semantics=dim_sem,
                vmem_limit_bytes=vmem_limit,
            ),
            cost_estimate=cost,
        )(at, x_in)

    try:
        return call(True)
    except Exception:  # single-buffering unsupported -> default double buffering
        return call(False)


def nconv(x: jax.Array, A: jax.Array, *,
          target_step_bytes: int = _TARGET_STEP_BYTES) -> jax.Array:
    """Pallas implementation of einsum('nwc,wv->nvc', x, A).

    x: [N, W, C], A: [W, V]  ->  [N, V, C]
    """
    N, W, C = x.shape
    W2, V = A.shape
    assert W == W2, "adjacency first dim must match num_nodes of x"

    dtype = x.dtype
    itemsize = jnp.dtype(dtype).itemsize
    at = A.T  # tiny, one-time; lets the kernel contract on AT's last dim

    cost = pl.CostEstimate(
        flops=2 * N * W * V * C,
        transcendentals=0,
        bytes_accessed=(x.size + A.size + N * V * C) * itemsize,
    )

    bytes_per_col = (W + V) * itemsize                      # in + out bytes per column
    tile_cap_vmem = max(128, _MAX_TILE_VMEM_BYTES // (2 * bytes_per_col))

    if C % 128 == 0:
        # ---- Direct path: no wrapper-side HBM transposes at all. ----
        tc = min(target_step_bytes // bytes_per_col, tile_cap_vmem, C)
        tc = max(128, _round_down(tc, 128))
        tc = min(tc, C)
        grid = (N, pl.cdiv(C, tc))
        x_spec = pl.BlockSpec((None, W, tc), lambda n, j: (n, 0, j))
        o_spec = pl.BlockSpec((None, V, tc), lambda n, j: (n, 0, j))
        out_shape = jax.ShapeDtypeStruct((N, V, C), dtype)
        vmem = _vmem_limit(itemsize * (2 * V * W + 2 * tc * (W + V)))
        return _launch(at, x,
                       out_shape=out_shape, grid=grid,
                       a_index_map=lambda n, j: (0, 0),
                       x_spec=x_spec, o_spec=o_spec,
                       dim_sem=("parallel", "parallel"),
                       vmem_limit=vmem, cost=cost)

    # ---- Slab path (small / unaligned C): one big lane-dense matmul. ----
    NC = N * C
    x2 = jnp.transpose(x, (1, 0, 2)).reshape(W, NC)         # [W, N*C]

    if NC < 256:
        tile = NC                                            # single full block
    else:
        tile = min(target_step_bytes // bytes_per_col, tile_cap_vmem)
        tile = max(256, _round_down(tile, 256))
        # Ensure >= 2 column steps so both v7x TensorCores get work.
        tile = min(tile, _round_up(pl.cdiv(NC, 2), 128))

    grid = (pl.cdiv(NC, tile),)                              # boundary block masked (no jnp.pad)
    x_spec = pl.BlockSpec((W, tile), lambda j: (0, j))
    o_spec = pl.BlockSpec((V, tile), lambda j: (0, j))
    out_shape = jax.ShapeDtypeStruct((V, NC), dtype)
    vmem = _vmem_limit(itemsize * (2 * V * W + 2 * tile * (W + V)))

    out_flat = _launch(at, x2,
                       out_shape=out_shape, grid=grid,
                       a_index_map=lambda j: (0, 0),
                       x_spec=x_spec, o_spec=o_spec,
                       dim_sem=("parallel",),
                       vmem_limit=vmem, cost=cost)

    # Restore [N, V, C] layout (only needed on the small-C fallback path).
    return out_flat.reshape(V, N, C).transpose(1, 0, 2)


if __name__ == "__main__":
    key = jax.random.PRNGKey(0)
    kx, ka = jax.random.split(key)

    # Small shapes consistent with the module: [batch, num_nodes, feature_dim].
    batch, num_nodes, feat = 4, 16, 32
    x = jax.random.normal(kx, (batch, num_nodes, feat), dtype=jnp.float32)
    A = jax.random.normal(ka, (num_nodes, num_nodes), dtype=jnp.float32)

    out = nconv(x, A)
    jax.block_until_ready(out)
    ref = jnp.einsum("nwc,wv->nvc", x, A)
    assert out.shape == (batch, num_nodes, feat)
    assert jnp.allclose(out, ref, atol=1e-5, rtol=1e-5), "mismatch (slab path)"

    # Multi-tile slab path with a masked, non-divisible boundary block (NC=384).
    x_b = jax.random.normal(kx, (12, num_nodes, feat), dtype=jnp.float32)
    out_b = nconv(x_b, A)
    jax.block_until_ready(out_b)
    ref_b = jnp.einsum("nwc,wv->nvc", x_b, A)
    assert jnp.allclose(out_b, ref_b, atol=1e-5, rtol=1e-5), "mismatch (tiled slab)"

    # Direct path (feature dim multiple of 128): no wrapper transposes.
    x_c = jax.random.normal(kx, (2, num_nodes, 128), dtype=jnp.float32)
    out_c = nconv(x_c, A)
    jax.block_until_ready(out_c)
    ref_c = jnp.einsum("nwc,wv->nvc", x_c, A)
    assert out_c.shape == (2, num_nodes, 128)
    assert jnp.allclose(out_c, ref_c, atol=1e-5, rtol=1e-5), "mismatch (direct path)"

    print("KERNEL_OK")
</pallas_src>

<mosaic_0001>
module attributes {stable_mosaic.version = 11 : i64} {
  func.func @_nconv_kernel(%arg0: i32, %arg1: memref<16x16xf32, #tpu.memory_space<vmem>>, %arg2: memref<16x128xf32, #tpu.memory_space<vmem>>, %arg3: memref<16x128xf32, #tpu.memory_space<vmem>>) attributes {dimension_semantics = [#tpu.dimension_semantics<parallel>], iteration_bounds = array<i64: 1>, scalar_prefetch = 0 : i64, scratch_operands = 0 : i64, tpu.core_type = #tpu.core_type<tc>, window_params = [{pipeline_mode = #tpu.pipeline_mode<synchronous>, transform_indices = @transform_0, window_bounds = array<i64: 16, 16>}, {transform_indices = @transform_1, window_bounds = array<i64: 16, 128>}, {transform_indices = @transform_2, window_bounds = array<i64: 16, 128>}]} {
    %c0 = arith.constant 0 : index
    %c0_0 = arith.constant 0 : index
    %0 = vector.load %arg1[%c0, %c0_0] : memref<16x16xf32, #tpu.memory_space<vmem>>, vector<16x16xf32>
    %c0_1 = arith.constant 0 : index
    %c0_2 = arith.constant 0 : index
    %1 = vector.load %arg2[%c0_1, %c0_2] : memref<16x128xf32, #tpu.memory_space<vmem>>, vector<16x128xf32>
    %cst = arith.constant dense<0.000000e+00> : vector<16x128xf32>
    %2 = tpu.matmul %0, %1, %cst {dimension_numbers = #tpu.dot_dimension_numbers<[1], [0], [0], [1], [0, 0, 1, 1], [], []>} : vector<16x16xf32>, vector<16x128xf32>, vector<16x128xf32> -> vector<16x128xf32>
    %c0_3 = arith.constant 0 : index
    %c0_4 = arith.constant 0 : index
    %3 = vector.load %arg3[%c0_3, %c0_4] : memref<16x128xf32, #tpu.memory_space<vmem>>, vector<16x128xf32>
    tpu.vector_store %arg3[%c0_3, %c0_4], %2 {strides = array<i32>} : memref<16x128xf32, #tpu.memory_space<vmem>>, vector<16x128xf32>,
    return
  }
  func.func @transform_0(%arg0: i32) -> (i32, i32) {
    %c0_i32 = arith.constant 0 : i32
    %c0_i32_0 = arith.constant 0 : i32
    %c0_i32_1 = arith.constant 0 : i32
    return %c0_i32, %c0_i32_0 : i32, i32
  }
  func.func @transform_1(%arg0: i32) -> (i32, i32) {
    %c0_i32 = arith.constant 0 : i32
    %c0_i32_0 = arith.constant 0 : i32
    return %c0_i32, %arg0 : i32, i32
  }
  func.func @transform_2(%arg0: i32) -> (i32, i32) {
    %c0_i32 = arith.constant 0 : i32
    %c0_i32_0 = arith.constant 0 : i32
    return %c0_i32, %arg0 : i32, i32
  }
}

module attributes {stable_mosaic.version = 11 : i64} {
  func.func @_nconv_kernel(%arg0: i32, %arg1: memref<16x16xf32, #tpu.memory_space<vmem>>, %arg2: memref<16x128xf32, #tpu.memory_space<vmem>>, %arg3: memref<16x128xf32, #tpu.memory_space<vmem>>) attributes {dimension_semantics = [#tpu.dimension_semantics<parallel>], iteration_bounds = array<i64: 1>, scalar_prefetch = 0 : i64, scratch_operands = 0 : i64, tpu.core_type = #tpu.core_type<tc>, window_params = [{pipeline_mode = #tpu.pipeline_mode<synchronous>, transform_indices = @transform_0, window_bounds = array<i64: 16, 16>}, {transform_indices = @transform_1, window_bounds = array<i64: 16, 128>}, {transform_indices = @transform_2, window_bounds = array<i64: 16, 128>}]} {
    %c0 = arith.constant 0 : index
    %c0_0 = arith.constant 0 : index
    %0 = vector.load %arg1[%c0, %c0_0] : memref<16x16xf32, #tpu.memory_space<vmem>>, vector<16x16xf32>
    %c0_1 = arith.constant 0 : index
    %c0_2 = arith.constant 0 : index
    %1 = vector.load %arg2[%c0_1, %c0_2] : memref<16x128xf32, #tpu.memory_space<vmem>>, vector<16x128xf32>
    %cst = arith.constant dense<0.000000e+00> : vector<16x128xf32>
    %2 = tpu.matmul %0, %1, %cst {dimension_numbers = #tpu.dot_dimension_numbers<[1], [0], [0], [1], [0, 0, 1, 1], [], []>} : vector<16x16xf32>, vector<16x128xf32>, vector<16x128xf32> -> vector<16x128xf32>
    %c0_3 = arith.constant 0 : index
    %c0_4 = arith.constant 0 : index
    %3 = vector.load %arg3[%c0_3, %c0_4] : memref<16x128xf32, #tpu.memory_space<vmem>>, vector<16x128xf32>
    tpu.vector_store %arg3[%c0_3, %c0_4], %2 {strides = array<i32>} : memref<16x128xf32, #tpu.memory_space<vmem>>, vector<16x128xf32>,
    return
  }
  func.func @transform_0(%arg0: i32) -> (i32, i32) {
    %c0_i32 = arith.constant 0 : i32
    %c0_i32_0 = arith.constant 0 : i32
    %c0_i32_1 = arith.constant 0 : i32
    return %c0_i32, %c0_i32_0 : i32, i32
  }
  func.func @transform_1(%arg0: i32) -> (i32, i32) {
    %c0_i32 = arith.constant 0 : i32
    %c0_i32_0 = arith.constant 0 : i32
    return %c0_i32, %arg0 : i32, i32
  }
  func.func @transform_2(%arg0: i32) -> (i32, i32) {
    %c0_i32 = arith.constant 0 : i32
    %c0_i32_0 = arith.constant 0 : i32
    return %c0_i32, %arg0 : i32, i32
  }
}

</mosaic_0001>

<bundles_post_ra>
// kernel: tpu_custom_call.1
= control target key start
LH: loop header
LB: loop body
LE: loop exit
PB: predicated region body
PF: predicated region fallthrough
CT: control target
= control target key end

     0   :  { %7 = vsyncpa [#allocation3], 0  ;;  %s305_s0 = inlined_call_operand.hbm [shape: f32[16,16], index: 0, kind: input, shape index: {}]   ;;  %s306_s1 = inlined_call_operand.hbm [shape: f32[16,128], index: 1, kind: input, shape index: {}]   ;;  %s307_s2 = inlined_call_operand.hbm [shape: f32[16,128], index: 2, kind: output, shape index: {}]  }
   0x1   :  { %8 = vsyncpa [#allocation6], 0 }
   0x2   :  { %9 = vsyncpa [#allocation4], 0  ;;  %s240_s9 = smov [#allocation2]   ;;  %s168_s13 = scalar_lea.hbm %s305_s0, 256 }
   0x3   :  { %s15_s10 = sshll.u32 %s240_s9, 4  ;;  %p169_p0 = scmp.ne.s32.totalorder %s305_s0, %s168_s13  ;;  %s16_s10 = int_to_ptr.vmem [resolvable:$true] %s15_s10 }
   0x4   :  { %p172_p1 = scmp.lt.u32.totalorder %s168_s13, %s305_s0 }
   0x6   :  { %p174_p2 = pnand %p172_p1, %p169_p0 }
   0x8   :  { %177 = shalt.err (!%p174_p2)
}
   0x9   :  { %s178_s18 = scalar_lea.vmem %s16_s10, 256  ;;  %p183_p4 = scmp.lt.s32.totalorder %s16_s10, %s16_s10 }
   0xa   :  { %p179_p3 = scmp.ne.s32.totalorder %s16_s10, %s178_s18  ;;  %p184_p5 = scmp.lt.s32.totalorder %s178_s18, %s178_s18 }
   0xc   :  { %p185_p6 = por %p184_p5, %p183_p4 }
   0xe   :  { %p186_p7 = pnand %p185_p6, %p179_p3 }
  0x10   :  { %189 = shalt.err (!%p186_p7)
}
  0x11   :  { %s241_s19 = smov 128   ;;  %s242_s20 = smov 8  }
  0x12   :  { %21 = dma.hbm_to_vmem [thread:$0]  %s305_s0, 256, %s16_s10, [#allocation3], %s241_s19, %s241_s19, %s242_s20  }
  0x13   :  { %s243_s23 = smov [#allocation5]   ;;  %s190_s27 = scalar_lea.hbm %s306_s1, 256 }
  0x14   :  { %s27_s24 = sshll.u32 %s243_s23, 4  ;;  %p191_p8 = scmp.ne.s32.totalorder %s306_s1, %s190_s27  ;;  %s28_s24 = int_to_ptr.vmem [resolvable:$true] %s27_s24 }
  0x15   :  { %p194_p9 = scmp.lt.u32.totalorder %s190_s27, %s306_s1 }
  0x17   :  { %p196_p10 = pnand %p194_p9, %p191_p8 }
  0x19   :  { %199 = shalt.err (!%p196_p10)
}
  0x1a   :  { %s200_s4 = scalar_lea.vmem %s28_s24, 256  ;;  %p205_p12 = scmp.lt.s32.totalorder %s28_s24, %s28_s24 }
  0x1b   :  { %p201_p11 = scmp.ne.s32.totalorder %s28_s24, %s200_s4  ;;  %p206_p13 = scmp.lt.s32.totalorder %s200_s4, %s200_s4 }
  0x1d   :  { %p207_p0 = por %p206_p13, %p205_p12 }
  0x1f   :  { %p208_p1 = pnand %p207_p0, %p201_p11 }
  0x21   :  { %211 = shalt.err (!%p208_p1)
}
  0x22   :  { %33 = dma.hbm_to_vmem [thread:$0]  %s306_s1, 256, %s28_s24, [#allocation6], %s241_s19, %s241_s19, %s242_s20  }
  0x23   :  { %234 = dma.done.wait [#allocation3], 256  }
  0x24   :  { %235 = vsyncadd [#allocation3], 4294967040 }
  0x25   :  { %236 = dma.done.wait [#allocation6], 256  }
  0x26   :  { %237 = vsyncadd [#allocation6], 4294967040  ;;  %vm44_vm0 = vcmask 130048   ;;  %v42_v0 = vld [vmem:[#allocation5] sm:$0xff]  ;;  %v43_v1 = vld [vmem:[#allocation5 + $0x8] sm:$0xff]  ;;  %s244_s6 = smov [#allocation7]  }
  0x27   :  { %v40_v2 = vld [vmem:[#allocation2] sm:$0xff]  ;;  %v159_v3 = vpack.c.bf16 %v43_v1, %v42_v0  ;;  %v41_v4 = vld [vmem:[#allocation2 + $0x8] sm:$0xff]  ;;  %s133_s7 = sshll.u32 %s244_s6, 4  ;;  %s134_s7 = int_to_ptr.vmem [resolvable:$true] %s133_s7 }
  0x28   :  { %156 = vmatprep.mubr.msk.f32.mxu0 %vm44_vm0, %v40_v2  ;;  %s212_s1 = scalar_lea.vmem %s134_s7, 256  ;;  %p217_p3 = scmp.lt.s32.totalorder %s134_s7, %s134_s7 }
  0x29   :  { %160 = vmatprep.subr.bf16.mxu0 %v159_v3  ;;  %p213_p2 = scmp.ne.s32.totalorder %s134_s7, %s212_s1  ;;  %p218_p4 = scmp.lt.s32.totalorder %s212_s1, %s212_s1 }
  0x2a   :  { %162 = vmatpush3.bf16.msra.mxu0 %v159_v3 }
  0x2b   :  { %p219_p5 = por %p218_p4, %p217_p3 }
  0x2d   :  { %157 = vmatmul.mubr.msk.f32.vlgmr.msra.gmra.mrb[0].mxu0 %vm44_vm0, %v41_v4  ;;  %p220_p6 = pnand %p219_p5, %p213_p2 }
 0x100   :  { %v158_v5 = vpop.f32.mrb[0].mxu0 }
 0x101   :  { %127 = vst [vmem:[#allocation7 + $0x8] sm:$0xff] %v158_v5  ;;  %v117_v6 = vpop.f32.mrb[1].mxu0 }
 0x102   :  { %126 = vst [vmem:[#allocation7] sm:$0xff] %v117_v6 }
 0x103   :  { %223 = shalt.err (!%p220_p6)
}
 0x104   :  { %s224_s10 = scalar_lea.hbm %s307_s2, 256 }
 0x105   :  { %p225_p7 = scmp.ne.s32.totalorder %s307_s2, %s224_s10  ;;  %p228_p8 = scmp.lt.u32.totalorder %s224_s10, %s307_s2 }
 0x107   :  { %p230_p9 = pnand %p228_p8, %p225_p7 }
 0x109   :  { %233 = shalt.err (!%p230_p9)
}
 0x10a   :  { %139 = dma.vmem_to_hbm [thread:$0]  %s134_s7, 256, %s307_s2, [#allocation4], %s241_s19, %s241_s19, %s242_s20  }
 0x10b   :  { %238 = dma.done.wait [#allocation4], 256  }
 0x10c   :  { %239 = vsyncadd [#allocation4], 4294967040 }
 0x10d   :  { %143 = vsyncpa [#allocation3], 1 }
 0x10e   :  { %144 = vsyncpa [#allocation6], 1 }
 0x10f   :  { %145 = vsyncpa [#allocation4], 1 }

// kernel: tpu_custom_call.1
= control target key start
LH: loop header
LB: loop body
LE: loop exit
PB: predicated region body
PF: predicated region fallthrough
CT: control target
= control target key end

     0   :  { %7 = vsyncpa [#allocation3], 0  ;;  %s305_s0 = inlined_call_operand.hbm [shape: f32[16,16], index: 0, kind: input, shape index: {}]   ;;  %s306_s1 = inlined_call_operand.hbm [shape: f32[16,128], index: 1, kind: input, shape index: {}]   ;;  %s307_s2 = inlined_call_operand.hbm [shape: f32[16,128], index: 2, kind: output, shape index: {}]  }
   0x1   :  { %8 = vsyncpa [#allocation6], 0 }
   0x2   :  { %9 = vsyncpa [#allocation4], 0  ;;  %s240_s9 = smov [#allocation2]   ;;  %s168_s13 = scalar_lea.hbm %s305_s0, 256 }
   0x3   :  { %s15_s10 = sshll.u32 %s240_s9, 4  ;;  %p169_p0 = scmp.ne.s32.totalorder %s305_s0, %s168_s13  ;;  %s16_s10 = int_to_ptr.vmem [resolvable:$true] %s15_s10 }
   0x4   :  { %p172_p1 = scmp.lt.u32.totalorder %s168_s13, %s305_s0 }
   0x6   :  { %p174_p2 = pnand %p172_p1, %p169_p0 }
   0x8   :  { %177 = shalt.err (!%p174_p2)
}
   0x9   :  { %s178_s18 = scalar_lea.vmem %s16_s10, 256  ;;  %p183_p4 = scmp.lt.s32.totalorder %s16_s10, %s16_s10 }
   0xa   :  { %p179_p3 = scmp.ne.s32.totalorder %s16_s10, %s178_s18  ;;  %p184_p5 = scmp.lt.s32.totalorder %s178_s18, %s178_s18 }
   0xc   :  { %p185_p6 = por %p184_p5, %p183_p4 }
   0xe   :  { %p186_p7 = pnand %p185_p6, %p179_p3 }
  0x10   :  { %189 = shalt.err (!%p186_p7)
}
  0x11   :  { %s241_s19 = smov 128   ;;  %s242_s20 = smov 8  }
  0x12   :  { %21 = dma.hbm_to_vmem [thread:$0]  %s305_s0, 256, %s16_s10, [#allocation3], %s241_s19, %s241_s19, %s242_s20  }
  0x13   :  { %s243_s23 = smov [#allocation5]   ;;  %s190_s27 = scalar_lea.hbm %s306_s1, 256 }
  0x14   :  { %s27_s24 = sshll.u32 %s243_s23, 4  ;;  %p191_p8 = scmp.ne.s32.totalorder %s306_s1, %s190_s27  ;;  %s28_s24 = int_to_ptr.vmem [resolvable:$true] %s27_s24 }
  0x15   :  { %p194_p9 = scmp.lt.u32.totalorder %s190_s27, %s306_s1 }
  0x17   :  { %p196_p10 = pnand %p194_p9, %p191_p8 }
  0x19   :  { %199 = shalt.err (!%p196_p10)
}
  0x1a   :  { %s200_s4 = scalar_lea.vmem %s28_s24, 256  ;;  %p205_p12 = scmp.lt.s32.totalorder %s28_s24, %s28_s24 }
  0x1b   :  { %p201_p11 = scmp.ne.s32.totalorder %s28_s24, %s200_s4  ;;  %p206_p13 = scmp.lt.s32.totalorder %s200_s4, %s200_s4 }
  0x1d   :  { %p207_p0 = por %p206_p13, %p205_p12 }
  0x1f   :  { %p208_p1 = pnand %p207_p0, %p201_p11 }
  0x21   :  { %211 = shalt.err (!%p208_p1)
}
  0x22   :  { %33 = dma.hbm_to_vmem [thread:$0]  %s306_s1, 256, %s28_s24, [#allocation6], %s241_s19, %s241_s19, %s242_s20  }
  0x23   :  { %234 = dma.done.wait [#allocation3], 256  }
  0x24   :  { %235 = vsyncadd [#allocation3], 4294967040 }
  0x25   :  { %236 = dma.done.wait [#allocation6], 256  }
  0x26   :  { %237 = vsyncadd [#allocation6], 4294967040  ;;  %vm44_vm0 = vcmask 130048   ;;  %v42_v0 = vld [vmem:[#allocation5] sm:$0xff]  ;;  %v43_v1 = vld [vmem:[#allocation5 + $0x8] sm:$0xff]  ;;  %s244_s6 = smov [#allocation7]  }
  0x27   :  { %v40_v2 = vld [vmem:[#allocation2] sm:$0xff]  ;;  %v159_v3 = vpack.c.bf16 %v43_v1, %v42_v0  ;;  %v41_v4 = vld [vmem:[#allocation2 + $0x8] sm:$0xff]  ;;  %s133_s7 = sshll.u32 %s244_s6, 4  ;;  %s134_s7 = int_to_ptr.vmem [resolvable:$true] %s133_s7 }
  0x28   :  { %156 = vmatprep.mubr.msk.f32.mxu0 %vm44_vm0, %v40_v2  ;;  %s212_s1 = scalar_lea.vmem %s134_s7, 256  ;;  %p217_p3 = scmp.lt.s32.totalorder %s134_s7, %s134_s7 }
  0x29   :  { %160 = vmatprep.subr.bf16.mxu0 %v159_v3  ;;  %p213_p2 = scmp.ne.s32.totalorder %s134_s7, %s212_s1  ;;  %p218_p4 = scmp.lt.s32.totalorder %s212_s1, %s212_s1 }
  0x2a   :  { %162 = vmatpush3.bf16.msra.mxu0 %v159_v3 }
  0x2b   :  { %p219_p5 = por %p218_p4, %p217_p3 }
  0x2d   :  { %157 = vmatmul.mubr.msk.f32.vlgmr.msra.gmra.mrb[0].mxu0 %vm44_vm0, %v41_v4  ;;  %p220_p6 = pnand %p219_p5, %p213_p2 }
 0x100   :  { %v158_v5 = vpop.f32.mrb[0].mxu0 }
 0x101   :  { %127 = vst [vmem:[#allocation7 + $0x8] sm:$0xff] %v158_v5  ;;  %v117_v6 = vpop.f32.mrb[1].mxu0 }
 0x102   :  { %126 = vst [vmem:[#allocation7] sm:$0xff] %v117_v6 }
 0x103   :  { %223 = shalt.err (!%p220_p6)
}
 0x104   :  { %s224_s10 = scalar_lea.hbm %s307_s2, 256 }
 0x105   :  { %p225_p7 = scmp.ne.s32.totalorder %s307_s2, %s224_s10  ;;  %p228_p8 = scmp.lt.u32.totalorder %s224_s10, %s307_s2 }
 0x107   :  { %p230_p9 = pnand %p228_p8, %p225_p7 }
 0x109   :  { %233 = shalt.err (!%p230_p9)
}
 0x10a   :  { %139 = dma.vmem_to_hbm [thread:$0]  %s134_s7, 256, %s307_s2, [#allocation4], %s241_s19, %s241_s19, %s242_s20  }
 0x10b   :  { %238 = dma.done.wait [#allocation4], 256  }
 0x10c   :  { %239 = vsyncadd [#allocation4], 4294967040 }
 0x10d   :  { %143 = vsyncpa [#allocation3], 1 }
 0x10e   :  { %144 = vsyncpa [#allocation6], 1 }
 0x10f   :  { %145 = vsyncpa [#allocation4], 1 }

</bundles_post_ra>
